<compile_context>
chip_gen: v7x
topology: tpu7x:2x2x1
jax: 0.10.0
libtpu: 0.0.40
codegen_flags: <defaults>
</compile_context>

<pallas_src>
import math

import jax
import jax.numpy as jnp
from jax.experimental import pallas as pl
from jax.experimental.pallas import tpu as pltpu

_SUBLANE = 8
_LANE = 128
_ROW_TILE = 256          # rows per grid step once n_pad grows past this


def _round_up(x, m):
    return (x + m - 1) // m * m


# ----------------------------- Pallas kernel --------------------------------

def _sym_encoder_kernel(l_ref, r_ref, wl_ref, wr_ref, b1_ref, w2_ref, b2_ref,
                        o_ref):
    # l_ref : [n_tile, F_pad]    left activations (lane-dense, zero padded)
    # r_ref : [n_tile, S_pad]    right activations
    # wl_ref: [F_pad, H_pad]     left Linear weight  (zero-padded)
    # wr_ref: [S_pad, H_pad]     right Linear weight (zero-padded)
    # b1_ref: [1, H_pad]         b_left + b_right    (zero-padded)
    # w2_ref: [H_pad, O_pad]     second Linear weight (zero-padded)
    # b2_ref: [1, O_pad]
    # o_ref : [n_tile, O_pad]    lane-dense output slab (sliced inside jit)
    h = jnp.tanh(
        jnp.dot(l_ref[...], wl_ref[...], preferred_element_type=jnp.float32)
        + jnp.dot(r_ref[...], wr_ref[...], preferred_element_type=jnp.float32)
        + b1_ref[...])
    o_ref[...] = jnp.tanh(
        jnp.dot(h, w2_ref[...], preferred_element_type=jnp.float32)
        + b2_ref[...])


# ----------------------------- fused forward (traced) -----------------------

def _forward_math(left, right, wl, wr, b1, w2, b2):
    """Pad -> pallas_call -> slice.  All shapes static at trace time."""
    n, F = left.shape
    S = right.shape[1]
    F_pad, H_pad = wl.shape
    S_pad = wr.shape[0]
    O_pad = w2.shape[1]

    # Bucket the row count (power of two, min 8) so varying list lengths map
    # onto a handful of kernel shapes instead of one per multiple-of-8.
    n_pad = max(_SUBLANE, int(pl.next_power_of_2(n)))
    n_tile = min(n_pad, _ROW_TILE)
    grid = (n_pad // n_tile,)

    # Zero-pad rows and lanes inside the jit (fused with the rest, 1 dispatch).
    left_p = jnp.zeros((n_pad, F_pad), jnp.float32).at[:n, :F].set(left)
    right_p = jnp.zeros((n_pad, S_pad), jnp.float32).at[:n, :S].set(right)

    out = pl.pallas_call(
        _sym_encoder_kernel,
        out_shape=jax.ShapeDtypeStruct((n_pad, O_pad), jnp.float32),
        grid=grid,
        in_specs=[
            pl.BlockSpec((n_tile, F_pad), lambda i: (i, 0)),
            pl.BlockSpec((n_tile, S_pad), lambda i: (i, 0)),
            pl.BlockSpec((F_pad, H_pad), lambda i: (0, 0)),
            pl.BlockSpec((S_pad, H_pad), lambda i: (0, 0)),
            pl.BlockSpec((1, H_pad), lambda i: (0, 0)),
            pl.BlockSpec((H_pad, O_pad), lambda i: (0, 0)),
            pl.BlockSpec((1, O_pad), lambda i: (0, 0)),
        ],
        out_specs=pl.BlockSpec((n_tile, O_pad), lambda i: (i, 0)),
        compiler_params=pltpu.CompilerParams(
            dimension_semantics=("parallel",)),   # 2x TC sharding on v7x
    )(left_p, right_p, wl, wr, b1, w2, b2)

    return out[:n, :F]          # strip row + lane padding


@jax.jit
def _core_batched(left, right, wl, wr, b1, w2, b2):
    return _forward_math(left, right, wl, wr, b1, w2, b2)


@jax.jit
def _core_list(left_tuple, right_tuple, wl, wr, b1, w2, b2):
    left = jnp.concatenate(left_tuple, axis=0)     # bundle(), fused in-jit
    right = jnp.concatenate(right_tuple, axis=0)
    out = _forward_math(left, right, wl, wr, b1, w2, b2)
    # unbundle(): one split inside the jit, not n eager per-row slices.
    return tuple(jnp.split(out, out.shape[0], axis=0))


# ----------------------------- public API -----------------------------------

def bundle(xs):
    if xs is None:
        return None
    return jnp.concatenate(tuple(xs), axis=0)


def unbundle(x):
    if x is None:
        import itertools
        return itertools.repeat(None)
    return list(jnp.split(x, x.shape[0], axis=0))


def sym_encoder_forward(params, left_in, right_in):
    """List-in / list-out, matching the PyTorch module. One jit dispatch."""
    outs = _core_list(tuple(left_in), tuple(right_in),
                      params["wl"], params["wr"], params["b1"],
                      params["w2"], params["b2"])
    return list(outs)


def sym_encoder_forward_batched(params, left, right):
    """Stacked [n, F], [n, S] -> [n, F]. Preferred when batching many nodes."""
    return _core_batched(left, right, params["wl"], params["wr"],
                         params["b1"], params["w2"], params["b2"])


# ----------------------------- deterministic params -------------------------

def init_params(key, featureSize, symmetrySize, hiddenSize):
    """nn.Linear-style uniform(-1/sqrt(fan_in), 1/sqrt(fan_in)) init.
    Weights stored [in, out] (y = x @ W + b) and lane-padded to 128 once."""
    ks = jax.random.split(key, 6)

    def lin(kw, kb, fan_in, fan_out):
        bound = 1.0 / math.sqrt(fan_in)
        w = jax.random.uniform(kw, (fan_in, fan_out), jnp.float32, -bound, bound)
        b = jax.random.uniform(kb, (1, fan_out), jnp.float32, -bound, bound)
        return w, b

    wl, bl = lin(ks[0], ks[1], featureSize, hiddenSize)    # self.left
    wr, br = lin(ks[2], ks[3], symmetrySize, hiddenSize)   # self.right
    w2, b2 = lin(ks[4], ks[5], hiddenSize, featureSize)    # self.second

    F_pad = _round_up(featureSize, _LANE)
    S_pad = _round_up(symmetrySize, _LANE)
    H_pad = _round_up(hiddenSize, _LANE)
    O_pad = _round_up(featureSize, _LANE)

    def z(r, c):
        return jnp.zeros((r, c), jnp.float32)

    params = {
        "wl": z(F_pad, H_pad).at[:featureSize, :hiddenSize].set(wl),
        "wr": z(S_pad, H_pad).at[:symmetrySize, :hiddenSize].set(wr),
        "b1": z(1, H_pad).at[:, :hiddenSize].set(bl + br),
        "w2": z(H_pad, O_pad).at[:hiddenSize, :featureSize].set(w2),
        "b2": z(1, O_pad).at[:, :featureSize].set(b2),
    }
    raw = {"wl": wl, "bl": bl, "wr": wr, "br": br, "w2": w2, "b2": b2}
    return params, raw


def _ref_forward(raw, left, right):
    hp = jax.lax.Precision.HIGHEST
    h = jnp.tanh(jnp.dot(left, raw["wl"], precision=hp) + raw["bl"]
                 + jnp.dot(right, raw["wr"], precision=hp) + raw["br"])
    return jnp.tanh(jnp.dot(h, raw["w2"], precision=hp) + raw["b2"])


# ----------------------------- main ------------------------------------------

if __name__ == "__main__":
    featureSize, symmetrySize, hiddenSize = 32, 8, 32
    n = 3   # number of items in the left_in / right_in lists

    key = jax.random.PRNGKey(0)
    kp, kl, kr = jax.random.split(key, 3)
    params, raw = init_params(kp, featureSize, symmetrySize, hiddenSize)

    lkeys = jax.random.split(kl, n)
    rkeys = jax.random.split(kr, n)
    left_in = [jax.random.normal(lkeys[i], (1, featureSize), jnp.float32)
               for i in range(n)]
    right_in = [jax.random.normal(rkeys[i], (1, symmetrySize), jnp.float32)
                for i in range(n)]

    # List-in / list-out path (PyTorch module interface), single dispatch.
    outs = sym_encoder_forward(params, left_in, right_in)
    outs = jax.block_until_ready(outs)
    got = jnp.concatenate(outs, axis=0)

    # Batched path (recommended when stacking many invocations).
    left_b = jnp.concatenate(left_in, axis=0)
    right_b = jnp.concatenate(right_in, axis=0)
    got_b = jax.block_until_ready(
        sym_encoder_forward_batched(params, left_b, right_b))

    # Correctness vs. pure-JAX reference of the PyTorch math.
    ref = _ref_forward(raw, left_b, right_b)
    assert got.shape == (n, featureSize)
    assert got_b.shape == (n, featureSize)
    # TODO(synk): in-kernel dots use default MXU precision; pass
    # precision=HIGHEST if tighter than ~1e-3 accuracy is ever required.
    assert jnp.allclose(got, ref, atol=2e-3, rtol=2e-3), \
        float(jnp.abs(got - ref).max())
    assert jnp.allclose(got_b, ref, atol=2e-3, rtol=2e-3), \
        float(jnp.abs(got_b - ref).max())

    print("KERNEL_OK")
</pallas_src>

<mosaic_0001>
module attributes {stable_mosaic.version = 11 : i64} {
  func.func @_sym_encoder_kernel(%arg0: i32, %arg1: memref<8x128xf32, #tpu.memory_space<vmem>>, %arg2: memref<8x128xf32, #tpu.memory_space<vmem>>, %arg3: memref<128x128xf32, #tpu.memory_space<vmem>>, %arg4: memref<128x128xf32, #tpu.memory_space<vmem>>, %arg5: memref<1x128xf32, #tpu.memory_space<vmem>>, %arg6: memref<128x128xf32, #tpu.memory_space<vmem>>, %arg7: memref<1x128xf32, #tpu.memory_space<vmem>>, %arg8: memref<8x128xf32, #tpu.memory_space<vmem>>) attributes {dimension_semantics = [#tpu.dimension_semantics<parallel>], iteration_bounds = array<i64: 1>, scalar_prefetch = 0 : i64, scratch_operands = 0 : i64, tpu.core_type = #tpu.core_type<tc>, window_params = [{transform_indices = @transform_0, window_bounds = array<i64: 8, 128>}, {transform_indices = @transform_1, window_bounds = array<i64: 8, 128>}, {pipeline_mode = #tpu.pipeline_mode<synchronous>, transform_indices = @transform_2, window_bounds = array<i64: 128, 128>}, {pipeline_mode = #tpu.pipeline_mode<synchronous>, transform_indices = @transform_3, window_bounds = array<i64: 128, 128>}, {pipeline_mode = #tpu.pipeline_mode<synchronous>, transform_indices = @transform_4, window_bounds = array<i64: 1, 128>}, {pipeline_mode = #tpu.pipeline_mode<synchronous>, transform_indices = @transform_5, window_bounds = array<i64: 128, 128>}, {pipeline_mode = #tpu.pipeline_mode<synchronous>, transform_indices = @transform_6, window_bounds = array<i64: 1, 128>}, {transform_indices = @transform_7, window_bounds = array<i64: 8, 128>}]} {
    %c0 = arith.constant 0 : index
    %c0_0 = arith.constant 0 : index
    %0 = vector.load %arg1[%c0, %c0_0] : memref<8x128xf32, #tpu.memory_space<vmem>>, vector<8x128xf32>
    %c0_1 = arith.constant 0 : index
    %c0_2 = arith.constant 0 : index
    %1 = vector.load %arg3[%c0_1, %c0_2] : memref<128x128xf32, #tpu.memory_space<vmem>>, vector<128x128xf32>
    %cst = arith.constant dense<0.000000e+00> : vector<8x128xf32>
    %2 = tpu.matmul %0, %1, %cst {dimension_numbers = #tpu.dot_dimension_numbers<[1], [0], [0], [1], [0, 0, 1, 1], [], []>} : vector<8x128xf32>, vector<128x128xf32>, vector<8x128xf32> -> vector<8x128xf32>
    %c0_3 = arith.constant 0 : index
    %c0_4 = arith.constant 0 : index
    %3 = vector.load %arg2[%c0_3, %c0_4] : memref<8x128xf32, #tpu.memory_space<vmem>>, vector<8x128xf32>
    %c0_5 = arith.constant 0 : index
    %c0_6 = arith.constant 0 : index
    %4 = vector.load %arg4[%c0_5, %c0_6] : memref<128x128xf32, #tpu.memory_space<vmem>>, vector<128x128xf32>
    %cst_7 = arith.constant dense<0.000000e+00> : vector<8x128xf32>
    %5 = tpu.matmul %3, %4, %cst_7 {dimension_numbers = #tpu.dot_dimension_numbers<[1], [0], [0], [1], [0, 0, 1, 1], [], []>} : vector<8x128xf32>, vector<128x128xf32>, vector<8x128xf32> -> vector<8x128xf32>
    %6 = arith.addf %2, %5 : vector<8x128xf32>
    %c0_8 = arith.constant 0 : index
    %c0_9 = arith.constant 0 : index
    %7 = vector.load %arg5[%c0_8, %c0_9] : memref<1x128xf32, #tpu.memory_space<vmem>>, vector<1x128xf32>
    %8 = vector.broadcast %7 : vector<1x128xf32> to vector<8x128xf32>
    %9 = arith.addf %6, %8 : vector<8x128xf32>
    %10 = math.tanh %9 : vector<8x128xf32>
    %c0_10 = arith.constant 0 : index
    %c0_11 = arith.constant 0 : index
    %11 = vector.load %arg6[%c0_10, %c0_11] : memref<128x128xf32, #tpu.memory_space<vmem>>, vector<128x128xf32>
    %cst_12 = arith.constant dense<0.000000e+00> : vector<8x128xf32>
    %12 = tpu.matmul %10, %11, %cst_12 {dimension_numbers = #tpu.dot_dimension_numbers<[1], [0], [0], [1], [0, 0, 1, 1], [], []>} : vector<8x128xf32>, vector<128x128xf32>, vector<8x128xf32> -> vector<8x128xf32>
    %c0_13 = arith.constant 0 : index
    %c0_14 = arith.constant 0 : index
    %13 = vector.load %arg7[%c0_13, %c0_14] : memref<1x128xf32, #tpu.memory_space<vmem>>, vector<1x128xf32>
    %14 = vector.broadcast %13 : vector<1x128xf32> to vector<8x128xf32>
    %15 = arith.addf %12, %14 : vector<8x128xf32>
    %16 = math.tanh %15 : vector<8x128xf32>
    %c0_15 = arith.constant 0 : index
    %c0_16 = arith.constant 0 : index
    %17 = vector.load %arg8[%c0_15, %c0_16] : memref<8x128xf32, #tpu.memory_space<vmem>>, vector<8x128xf32>
    tpu.vector_store %arg8[%c0_15, %c0_16], %16 {strides = array<i32>} : memref<8x128xf32, #tpu.memory_space<vmem>>, vector<8x128xf32>,
    return
  }
  func.func @transform_0(%arg0: i32) -> (i32, i32) {
    %c0_i32 = arith.constant 0 : i32
    %c0_i32_0 = arith.constant 0 : i32
    return %arg0, %c0_i32 : i32, i32
  }
  func.func @transform_1(%arg0: i32) -> (i32, i32) {
    %c0_i32 = arith.constant 0 : i32
    %c0_i32_0 = arith.constant 0 : i32
    return %arg0, %c0_i32 : i32, i32
  }
  func.func @transform_2(%arg0: i32) -> (i32, i32) {
    %c0_i32 = arith.constant 0 : i32
    %c0_i32_0 = arith.constant 0 : i32
    %c0_i32_1 = arith.constant 0 : i32
    return %c0_i32, %c0_i32_0 : i32, i32
  }
  func.func @transform_3(%arg0: i32) -> (i32, i32) {
    %c0_i32 = arith.constant 0 : i32
    %c0_i32_0 = arith.constant 0 : i32
    %c0_i32_1 = arith.constant 0 : i32
    return %c0_i32, %c0_i32_0 : i32, i32
  }
  func.func @transform_4(%arg0: i32) -> (i32, i32) {
    %c0_i32 = arith.constant 0 : i32
    %c0_i32_0 = arith.constant 0 : i32
    %c0_i32_1 = arith.constant 0 : i32
    return %c0_i32, %c0_i32_0 : i32, i32
  }
  func.func @transform_5(%arg0: i32) -> (i32, i32) {
    %c0_i32 = arith.constant 0 : i32
    %c0_i32_0 = arith.constant 0 : i32
    %c0_i32_1 = arith.constant 0 : i32
    return %c0_i32, %c0_i32_0 : i32, i32
  }
  func.func @transform_6(%arg0: i32) -> (i32, i32) {
    %c0_i32 = arith.constant 0 : i32
    %c0_i32_0 = arith.constant 0 : i32
    %c0_i32_1 = arith.constant 0 : i32
    return %c0_i32, %c0_i32_0 : i32, i32
  }
  func.func @transform_7(%arg0: i32) -> (i32, i32) {
    %c0_i32 = arith.constant 0 : i32
    %c0_i32_0 = arith.constant 0 : i32
    return %arg0, %c0_i32 : i32, i32
  }
}

</mosaic_0001>

<bundles_post_ra>
// kernel: _core_list.1
= control target key start
LH: loop header
LB: loop body
LE: loop exit
PB: predicated region body
PF: predicated region fallthrough
CT: control target
= control target key end

     0   :  { %12 = vsyncpa [#allocation3], 0  ;;  %s808_s0 = inlined_call_operand.vmem [shape: f32[8,128], index: 0, kind: input, shape index: {}]   ;;  %s809_s1 = inlined_call_operand.vmem [shape: f32[8,128], index: 1, kind: input, shape index: {}]   ;;  %s810_s2 = inlined_call_operand.hbm [shape: f32[128,128], index: 2, kind: input, shape index: {}]   ;;  %s811_s3 = inlined_call_operand.hbm [shape: f32[128,128], index: 3, kind: input, shape index: {}]   ;;  %s812_s4 = inlined_call_operand.vmem [shape: f32[1,128], index: 4, kind: input, shape index: {}]   ;;  %s813_s5 = inlined_call_operand.hbm [shape: f32[128,128], index: 5, kind: input, shape index: {}]   ;;  %s814_s6 = inlined_call_operand.vmem [shape: f32[1,128], index: 6, kind: input, shape index: {}]   ;;  %s815_s7 = inlined_call_operand.vmem [shape: f32[8,128], index: 7, kind: output, shape index: {}]  }
   0x1   :  { %13 = vsyncpa [#allocation5], 0  ;;  %s663_s24 = smov [#allocation4]   ;;  %s664_s26 = smov [#allocation2]  }
   0x2   :  { %s35_s25 = sshll.u32 %s663_s24, 4  ;;  %s23_s27 = sshll.u32 %s664_s26, 4  ;;  %s36_s25 = int_to_ptr.vmem [resolvable:$true] %s35_s25  ;;  %s711_s27 = int_to_ptr.vmem [resolvable:$true] %s23_s27 }
   0x3   :  { %s593_s30 = scalar_lea.hbm %s811_s3, 2048 }
   0x4   :  { %p594_p0 = scmp.ne.s32.totalorder %s811_s3, %s593_s30  ;;  %p597_p1 = scmp.lt.u32.totalorder %s593_s30, %s811_s3 }
   0x6   :  { %p599_p2 = pnand %p597_p1, %p594_p0 }
   0x8   :  { %602 = shalt.err (!%p599_p2)
}
   0x9   :  { %s603_s12 = scalar_lea.vmem %s36_s25, 2048  ;;  %p608_p4 = scmp.lt.s32.totalorder %s36_s25, %s36_s25 }
   0xa   :  { %p604_p3 = scmp.ne.s32.totalorder %s36_s25, %s603_s12  ;;  %p609_p5 = scmp.lt.s32.totalorder %s603_s12, %s603_s12 }
   0xc   :  { %p610_p6 = por %p609_p5, %p608_p4 }
   0xe   :  { %p611_p7 = pnand %p610_p6, %p604_p3 }
  0x10   :  { %614 = shalt.err (!%p611_p7)
}
  0x11   :  { %s665_s13 = smov 128   ;;  %s666_s14 = smov 8  }
  0x12   :  { %41 = dma.hbm_to_vmem [thread:$0]  %s811_s3, 2048, %s36_s25, [#allocation5], %s665_s13, %s665_s13, %s666_s14  }
  0x13   :  { %s615_s19 = scalar_lea.hbm %s810_s2, 2048 }
  0x14   :  { %p616_p8 = scmp.ne.s32.totalorder %s810_s2, %s615_s19  ;;  %p619_p9 = scmp.lt.u32.totalorder %s615_s19, %s810_s2 }
  0x16   :  { %p621_p10 = pnand %p619_p9, %p616_p8 }
  0x18   :  { %624 = shalt.err (!%p621_p10)
}
  0x19   :  { %s625_s24 = scalar_lea.vmem %s711_s27, 2048  ;;  %p630_p12 = scmp.lt.s32.totalorder %s711_s27, %s711_s27 }
  0x1a   :  { %p626_p11 = scmp.ne.s32.totalorder %s711_s27, %s625_s24  ;;  %p631_p13 = scmp.lt.s32.totalorder %s625_s24, %s625_s24 }
  0x1c   :  { %p632_p0 = por %p631_p13, %p630_p12 }
  0x1e   :  { %p633_p1 = pnand %p632_p0, %p626_p11 }
  0x20   :  { %636 = shalt.err (!%p633_p1)
}
  0x21   :  { %29 = dma.hbm_to_vmem [thread:$0]  %s810_s2, 2048, %s711_s27, [#allocation3], %s665_s13, %s665_s13, %s666_s14  }
  0x22   :  { %s667_s26 = smov [#allocation6]   ;;  %s637_s8 = scalar_lea.hbm %s813_s5, 2048 }
  0x23   :  { %s49_s28 = sshll.u32 %s667_s26, 4  ;;  %p638_p2 = scmp.ne.s32.totalorder %s813_s5, %s637_s8  ;;  %s50_s28 = int_to_ptr.vmem [resolvable:$true] %s49_s28 }
  0x24   :  { %p641_p3 = scmp.lt.u32.totalorder %s637_s8, %s813_s5 }
  0x26   :  { %p643_p4 = pnand %p641_p3, %p638_p2 }
  0x28   :  { %646 = shalt.err (!%p643_p4)
}
  0x29   :  { %s647_s15 = scalar_lea.vmem %s50_s28, 2048  ;;  %p652_p6 = scmp.lt.s32.totalorder %s50_s28, %s50_s28 }
  0x2a   :  { %p648_p5 = scmp.ne.s32.totalorder %s50_s28, %s647_s15  ;;  %p653_p7 = scmp.lt.s32.totalorder %s647_s15, %s647_s15 }
  0x2c   :  { %p654_p8 = por %p653_p7, %p652_p6 }
  0x2e   :  { %p655_p9 = pnand %p654_p8, %p648_p5 }
  0x30   :  { %658 = shalt.err (!%p655_p9)
}
  0x31   :  { %55 = dma.hbm_to_vmem [thread:$0]  %s813_s5, 2048, %s50_s28, [#allocation5], %s665_s13, %s665_s13, %s666_s14  }
  0x32   :  { %659 = dma.done.wait [#allocation3], 2048  }
  0x33   :  { %660 = vsyncadd [#allocation3], 4294965248 }
  0x34   :  { %661 = dma.done.wait [#allocation5], 4096  }
  0x35   :  { %662 = vsyncadd [#allocation5], 4294963200  ;;  %v668_v0 = vmov 0.0|0.0   ;;  %vm669_vm0 = vmmov 0   ;;  %v670_v1 = vmov 0.0   ;;  %v85_v2 = vld [vmem:[#allocation4] sm:$0xff] }
  0x36   :  { %509 = vmatprep.subr.bf16.mxu0 %v668_v0  ;;  %533 = vmatprep.subr.bf16.mxu1 %v668_v0  ;;  %v86_v3 = vld [vmem:[#allocation4 + $0x8] sm:$0xff]  ;;  %v68_v4 = vld [vmem:[#allocation2] sm:$0xff]  ;;  %v87_v7 = vld [vmem:[#allocation4 + $0x10] sm:$0xff] }
  0x37   :  { %436 = vmatprep.mubr.msk.f32.mxu0 %vm669_vm0, %v670_v1  ;;  %471 = vmatprep.mubr.msk.f32.mxu1 %vm669_vm0, %v670_v1  ;;  %v510_v5 = vpack.c.bf16 %v86_v3, %v85_v2  ;;  %v69_v6 = vld [vmem:[#allocation2 + $0x8] sm:$0xff]  ;;  %v88_v8 = vld [vmem:[#allocation4 + $0x18] sm:$0xff]  ;;  %v70_v10 = vld [vmem:[#allocation2 + $0x10] sm:$0xff] }
  0x38   :  { %v534_v9 = vpack.c.bf16 %v69_v6, %v68_v4  ;;  %v71_v11 = vld [vmem:[#allocation2 + $0x18] sm:$0xff]  ;;  %v513_v12 = vpack.c.bf16 %v88_v8, %v87_v7  ;;  %v89_v14 = vld [vmem:[#allocation4 + $0x20] sm:$0xff]  ;;  %v90_v15 = vld [vmem:[#allocation4 + $0x28] sm:$0xff] }
  0x39   :  { %511 = vmatpush3.bf16.msra.mxu0 %v510_v5  ;;  %v537_v13 = vpack.c.bf16 %v71_v11, %v70_v10  ;;  %v72_v16 = vld [vmem:[#allocation2 + $0x20] sm:$0xff]  ;;  %v73_v17 = vld [vmem:[#allocation2 + $0x28] sm:$0xff]  ;;  %v516_v18 = vpack.c.bf16 %v90_v15, %v89_v14  ;;  %v91_v20 = vld [vmem:[#allocation4 + $0x30] sm:$0xff] }
  0x3a   :  { %535 = vmatpush3.bf16.msra.mxu1 %v534_v9  ;;  %512 = vmatprep.subr.bf16.mxu0 %v668_v0  ;;  %v540_v19 = vpack.c.bf16 %v73_v17, %v72_v16  ;;  %v92_v21 = vld [vmem:[#allocation4 + $0x38] sm:$0xff]  ;;  %v74_v22 = vld [vmem:[#allocation2 + $0x30] sm:$0xff]  ;;  %v93_v26 = vld [vmem:[#allocation4 + $0x40] sm:$0xff] }
  0x3b   :  { %536 = vmatprep.subr.bf16.mxu1 %v668_v0  ;;  %v75_v23 = vld [vmem:[#allocation2 + $0x38] sm:$0xff]  ;;  %v519_v24 = vpack.c.bf16 %v92_v21, %v91_v20  ;;  %v94_v27 = vld [vmem:[#allocation4 + $0x48] sm:$0xff]  ;;  %v76_v28 = vld [vmem:[#allocation2 + $0x40] sm:$0xff] }
  0x3c   :  { %v543_v25 = vpack.c.bf16 %v75_v23, %v74_v22  ;;  %v77_v29 = vld [vmem:[#allocation2 + $0x48] sm:$0xff]  ;;  %v522_v30 = vpack.c.bf16 %v94_v27, %v93_v26  ;;  %v95_v32 = vld [vmem:[#allocation4 + $0x50] sm:$0xff]  ;;  %v96_v33 = vld [vmem:[#allocation4 + $0x58] sm:$0xff] }
  0x3d   :  { %514 = vmatpush3.bf16.msra.mxu0 %v513_v12  ;;  %v546_v31 = vpack.c.bf16 %v77_v29, %v76_v28  ;;  %v78_v34 = vld [vmem:[#allocation2 + $0x50] sm:$0xff]  ;;  %v79_v35 = vld [vmem:[#allocation2 + $0x58] sm:$0xff]  ;;  %v525_v36 = vpack.c.bf16 %v96_v33, %v95_v32  ;;  %v97_v38 = vld [vmem:[#allocation4 + $0x60] sm:$0xff] }
  0x3e   :  { %538 = vmatpush3.bf16.msra.mxu1 %v537_v13  ;;  %515 = vmatprep.subr.bf16.mxu0 %v668_v0  ;;  %v549_v37 = vpack.c.bf16 %v79_v35, %v78_v34  ;;  %v98_v39 = vld [vmem:[#allocation4 + $0x68] sm:$0xff]  ;;  %v80_v40 = vld [vmem:[#allocation2 + $0x60] sm:$0xff]  ;;  %v99_v44 = vld [vmem:[#allocation4 + $0x70] sm:$0xff] }
  0x3f   :  { %539 = vmatprep.subr.bf16.mxu1 %v668_v0  ;;  %v81_v41 = vld [vmem:[#allocation2 + $0x68] sm:$0xff]  ;;  %v528_v42 = vpack.c.bf16 %v98_v39, %v97_v38  ;;  %v100_v45 = vld [vmem:[#allocation4 + $0x78] sm:$0xff]  ;;  %v82_v46 = vld [vmem:[#allocation2 + $0x70] sm:$0xff] }
  0x40   :  { %v552_v43 = vpack.c.bf16 %v81_v41, %v80_v40  ;;  %v83_v47 = vld [vmem:[#allocation2 + $0x78] sm:$0xff]  ;;  %v531_v48 = vpack.c.bf16 %v100_v45, %v99_v44  ;;  %v250_v50 = vld [vmem:[#allocation6] sm:$0xff]  ;;  %v251_v51 = vld [vmem:[#allocation6 + $0x8] sm:$0xff] }
  0x41   :  { %517 = vmatpush3.bf16.msra.mxu0 %v516_v18  ;;  %v555_v49 = vpack.c.bf16 %v83_v47, %v82_v46  ;;  %v84_v52 = vld [vmem:[%s809_s1] sm:$0xff]  ;;  %v558_v53 = vpack.c.bf16 %v251_v51, %v250_v50  ;;  %v253_v56 = vld [vmem:[#allocation6 + $0x18] sm:$0xff]  ;;  %v254_v58 = vld [vmem:[#allocation6 + $0x20] sm:$0xff] }
  0x42   :  { %541 = vmatpush3.bf16.msra.mxu1 %v540_v19  ;;  %518 = vmatprep.subr.bf16.mxu0 %v668_v0  ;;  %v67_v54 = vld [vmem:[%s808_s0] sm:$0xff]  ;;  %v255_v59 = vld [vmem:[#allocation6 + $0x28] sm:$0xff]  ;;  %v257_v62 = vld [vmem:[#allocation6 + $0x38] sm:$0xff] }
  0x43   :  { %542 = vmatprep.subr.bf16.mxu1 %v668_v0  ;;  %v252_v55 = vld [vmem:[#allocation6 + $0x10] sm:$0xff]  ;;  %v564_v60 = vpack.c.bf16 %v255_v59, %v254_v58  ;;  %v258_v2 = vld [vmem:[#allocation6 + $0x40] sm:$0xff]  ;;  %v259_v3 = vld [vmem:[#allocation6 + $0x48] sm:$0xff] }
  0x44   :  { %v561_v57 = vpack.c.bf16 %v253_v56, %v252_v55  ;;  %v256_v61 = vld [vmem:[#allocation6 + $0x30] sm:$0xff]  ;;  %v570_v4 = vpack.c.bf16 %v259_v3, %v258_v2  ;;  %v261_v5 = vld [vmem:[#allocation6 + $0x58] sm:$0xff]  ;;  %v262_v7 = vld [vmem:[#allocation6 + $0x60] sm:$0xff] }
  0x45   :  { %520 = vmatpush3.bf16.msra.mxu0 %v519_v24  ;;  %v567_v63 = vpack.c.bf16 %v257_v62, %v256_v61  ;;  %v263_v8 = vld [vmem:[#allocation6 + $0x68] sm:$0xff]  ;;  %v264_v10 = vld [vmem:[#allocation6 + $0x70] sm:$0xff]  ;;  %v265_v11 = vld [vmem:[#allocation6 + $0x78] sm:$0xff] }
  0x46   :  { %544 = vmatpush3.bf16.msra.mxu1 %v543_v25  ;;  %521 = vmatprep.subr.bf16.mxu0 %v668_v0  ;;  %v576_v9 = vpack.c.bf16 %v263_v8, %v262_v7  ;;  %v579_v12 = vpack.c.bf16 %v265_v11, %v264_v10  ;;  %v351_v15 = vld [vmem:[%s812_s4] ss:$0 sm:$0xff] }
  0x47   :  { %545 = vmatprep.subr.bf16.mxu1 %v668_v0  ;;  %v352_v21 = vld [vmem:[%s814_s6] ss:$0 sm:$0xff] }
  0x49   :  { %523 = vmatpush3.bf16.msra.mxu0 %v522_v30 }
  0x4a   :  { %547 = vmatpush3.bf16.msra.mxu1 %v546_v31  ;;  %524 = vmatprep.subr.bf16.mxu0 %v668_v0 }
  0x4b   :  { %548 = vmatprep.subr.bf16.mxu1 %v668_v0 }
  0x4d   :  { %526 = vmatpush3.bf16.msra.mxu0 %v525_v36 }
  0x4e   :  { %550 = vmatpush3.bf16.msra.mxu1 %v549_v37  ;;  %527 = vmatprep.subr.bf16.mxu0 %v668_v0 }
  0x4f   :  { %551 = vmatprep.subr.bf16.mxu1 %v668_v0 }
  0x51   :  { %529 = vmatpush3.bf16.msra.mxu0 %v528_v42 }
  0x52   :  { %553 = vmatpush3.bf16.msra.mxu1 %v552_v43  ;;  %530 = vmatprep.subr.bf16.mxu0 %v668_v0 }
  0x53   :  { %554 = vmatprep.subr.bf16.mxu1 %v668_v0 }
  0x55   :  { %532 = vmatpush3.bf16.msra.mxu0 %v531_v48 }
  0x56   :  { %556 = vmatpush3.bf16.msra.mxu1 %v555_v49  ;;  %557 = vmatprep.subr.bf16.mxu0 %v668_v0 }
  0x58   :  { %437 = vmatmul.mubr.f32.vlgmr.msra.gmra.mrb[0].mxu0 %v84_v52 }
  0x59   :  { %472 = vmatmul.mubr.f32.vlgmr.msra.gmra.mrb[0].mxu1 %v67_v54  ;;  %559 = vmatpush3.bf16.msra.mxu0 %v558_v53 }
  0x5a   :  { %560 = vmatprep.subr.bf16.mxu0 %v668_v0  ;;  %506 = vmatprep.mubr.msk.f32.mxu0 %vm669_vm0, %v670_v1  ;;  %v260_v1 = vld [vmem:[#allocation6 + $0x50] sm:$0xff] }
  0x5b   :  { %v573_v6 = vpack.c.bf16 %v261_v5, %v260_v1 }
  0x5d   :  { %562 = vmatpush3.bf16.msra.mxu0 %v561_v57 }
  0x5e   :  { %563 = vmatprep.subr.bf16.mxu0 %v668_v0 }
  0x61   :  { %565 = vmatpush3.bf16.msra.mxu0 %v564_v60 }
  0x62   :  { %566 = vmatprep.subr.bf16.mxu0 %v668_v0 }
  0x65   :  { %568 = vmatpush3.bf16.msra.mxu0 %v567_v63 }
  0x66   :  { %569 = vmatprep.subr.bf16.mxu0 %v668_v0 }
  0x69   :  { %571 = vmatpush3.bf16.msra.mxu0 %v570_v4 }
  0x6a   :  { %572 = vmatprep.subr.bf16.mxu0 %v668_v0 }
  0x6d   :  { %574 = vmatpush3.bf16.msra.mxu0 %v573_v6 }
  0x6e   :  { %575 = vmatprep.subr.bf16.mxu0 %v668_v0 }
  0x71   :  { %577 = vmatpush3.bf16.msra.mxu0 %v576_v9 }
  0x72   :  { %578 = vmatprep.subr.bf16.mxu0 %v668_v0 }
  0x75   :  { %580 = vmatpush3.bf16.msra.mxu0 %v579_v12 }
 0x12b   :  { %v167_v13 = vpop.f32.mrb[0].mxu0 }
 0x12c   :  { %v237_v14 = vpop.f32.mrb[0].mxu1  ;;  %v438_v16 = vpop.f32.mrb[1].mxu0 }
 0x12d   :  { %v238_v17 = vadd.f32 %v237_v14, %v167_v13  ;;  %v473_v18 = vpop.f32.mrb[1].mxu1 }
 0x12f   :  { %v248_v19 = vadd.f32 %v351_v15, %v238_v17 }
 0x131   :  { %589 = vtanh.f32 %v248_v19 }
 0x13b   :  { %v590_v20 = vpop.eup %589 }
 0x13c   :  { %507 = vmatmul.mubr.f32.vlgmr.msra.gmra.mrb[2].mxu0 %v590_v20 }
 0x20f   :  { %v339_v22 = vpop.f32.mrb[2].mxu0 }
 0x210   :  { %v340_v0 = vadd.f32 %v352_v21, %v339_v22  ;;  %v508_v23 = vpop.f32.mrb[3].mxu0 }
 0x212   :  { %591 = vtanh.f32 %v340_v0 }
 0x21c   :  { %v592_v24 = vpop.eup %591 }
 0x21d   :  { %344 = vst [vmem:[%s815_s7] sm:$0xff] %v592_v24 }
 0x21e   :  { %349 = vsyncpa [#allocation3], 1 }
 0x21f   :  { %350 = vsyncpa [#allocation5], 1 }

</bundles_post_ra>
